<compile_context>
chip_gen: v6e
topology: v6e:2x2x1
jax: 0.10.0
libtpu: 0.0.40
codegen_flags: <defaults>
</compile_context>

<pallas_src>
import functools

import jax
import jax.numpy as jnp
from jax.experimental import pallas as pl
from jax.experimental.pallas import tpu as pltpu


_OUT_LANES = 128  # lane-dense padded width for the final (B, 1) output
_VMEM_SPEC = pl.BlockSpec(memory_space=pltpu.MemorySpace.VMEM)


# ---------------------------------------------------------------------------
# Fused kernel: all hidden layers + output layer in one pallas_call
# ---------------------------------------------------------------------------
def _make_fused_kernel(n_hidden):
    """Build a kernel fusing n_hidden x (Linear+BN+ReLU) and the final Linear.

    Positional ref layout:
      x_ref                              (B, Din)        f32
      [w_i, scale_i, shift_i] * n_hidden (Din_i, Dout_i), (1, Dout_i), (1, Dout_i)
         scale_i = gamma / sqrt(running_var + eps)
         shift_i = scale_i * bias_i + (beta - running_mean * scale_i)   # bias folded
      w_out, b_out                       (Dlast, 128), (1, 128)   zero-padded lanes
      o_ref                              (B, 128)        f32   (lane-dense output)
    """

    def kernel(*refs):
        x_ref = refs[0]
        o_ref = refs[-1]
        x = x_ref[...]
        idx = 1
        for _ in range(n_hidden):
            w = refs[idx][...]
            scale = refs[idx + 1][...]
            shift = refs[idx + 2][...]
            idx += 3
            z = jnp.dot(x, w, preferred_element_type=jnp.float32)
            x = jnp.maximum(z * scale + shift, 0.0)  # folded BN (eval) + ReLU
            # TODO(synk): dropout is identity in eval mode; training-mode
            # dropout / batch-statistics BN are intentionally not implemented.
        w_out = refs[idx][...]
        b_out = refs[idx + 1][...]
        o_ref[...] = jnp.dot(x, w_out, preferred_element_type=jnp.float32) + b_out

    return kernel


# ---------------------------------------------------------------------------
# Wrapper (single jit over the whole forward, single pallas_call)
# ---------------------------------------------------------------------------
@functools.partial(jax.jit, static_argnames=("n_hidden",))
def _forward_impl(x, flat_params, n_hidden):
    batch = x.shape[0]
    y_padded = pl.pallas_call(
        _make_fused_kernel(n_hidden),
        out_shape=jax.ShapeDtypeStruct((batch, _OUT_LANES), jnp.float32),
        in_specs=[_VMEM_SPEC] * (1 + len(flat_params)),
        out_specs=_VMEM_SPEC,
    )(x, *flat_params)
    return y_padded[:, :1]  # slice back to (batch, 1); padding lanes are exact zeros


def neural_network_forward(x, fused_params, n_hidden):
    """Full forward pass (eval mode). x: (batch, input_size) f32 -> (batch, 1)."""
    return _forward_impl(x, tuple(fused_params), n_hidden)


# ---------------------------------------------------------------------------
# Parameter construction (mimics nn.Linear / nn.BatchNorm1d) + folding
# ---------------------------------------------------------------------------
def init_raw_params(key, input_size, hidden_sizes):
    """Raw per-layer parameters in PyTorch layout semantics (W stored as Din x Dout)."""
    hidden = []
    prev = input_size
    for h in hidden_sizes:
        key, kw, kb, kg, kbt, km, kv = jax.random.split(key, 7)
        bound = 1.0 / jnp.sqrt(prev)
        hidden.append(
            dict(
                w=jax.random.uniform(kw, (prev, h), jnp.float32, -bound, bound),
                b=jax.random.uniform(kb, (1, h), jnp.float32, -bound, bound),
                # Non-trivial BN stats/affine to exercise the folding path.
                gamma=1.0 + 0.1 * jax.random.normal(kg, (1, h), jnp.float32),
                beta=0.1 * jax.random.normal(kbt, (1, h), jnp.float32),
                running_mean=0.1 * jax.random.normal(km, (1, h), jnp.float32),
                running_var=jnp.abs(1.0 + 0.1 * jax.random.normal(kv, (1, h), jnp.float32)),
            )
        )
        prev = h
    key, kw, kb = jax.random.split(key, 3)
    bound = 1.0 / jnp.sqrt(prev)
    out = dict(
        w=jax.random.uniform(kw, (prev, 1), jnp.float32, -bound, bound),
        b=jax.random.uniform(kb, (1, 1), jnp.float32, -bound, bound),
    )
    return hidden, out


def fold_params(hidden_raw, out_raw, bn_eps=1e-5):
    """Fold BN (eval) + linear bias into per-layer (w, scale, shift); pad output to 128 lanes."""
    flat = []
    for p in hidden_raw:
        scale = p["gamma"] / jnp.sqrt(p["running_var"] + bn_eps)
        shift = p["beta"] - p["running_mean"] * scale
        shift_folded = scale * p["b"] + shift  # fold the linear bias in
        flat.extend([p["w"], scale, shift_folded])
    prev = out_raw["w"].shape[0]
    w_out = jnp.zeros((prev, _OUT_LANES), jnp.float32).at[:, :1].set(out_raw["w"])
    b_out = jnp.zeros((1, _OUT_LANES), jnp.float32).at[:, :1].set(out_raw["b"])
    flat.extend([w_out, b_out])
    return flat


# ---------------------------------------------------------------------------
# Main
# ---------------------------------------------------------------------------
if __name__ == "__main__":
    input_size = 16
    hidden_sizes = [32, 32]
    batch = 8
    bn_eps = 1e-5

    key = jax.random.PRNGKey(0)
    key, kx = jax.random.split(key)
    x = jax.random.normal(kx, (batch, input_size), jnp.float32)

    hidden_raw, out_raw = init_raw_params(key, input_size, hidden_sizes)
    fused_params = fold_params(hidden_raw, out_raw, bn_eps=bn_eps)

    y = neural_network_forward(x, fused_params, n_hidden=len(hidden_sizes))
    y = jax.block_until_ready(y)

    assert y.shape == (batch, 1), y.shape
    assert y.dtype == jnp.float32, y.dtype

    # Pure-JAX reference using the UNfolded parameters (PyTorch eval semantics).
    ref = x
    for p in hidden_raw:
        z = ref @ p["w"] + p["b"]
        z = (z - p["running_mean"]) / jnp.sqrt(p["running_var"] + bn_eps)
        z = z * p["gamma"] + p["beta"]
        ref = jnp.maximum(z, 0.0)
    ref = ref @ out_raw["w"] + out_raw["b"]
    assert jnp.allclose(y, ref, atol=1e-5, rtol=1e-5), jnp.max(jnp.abs(y - ref))

    print("KERNEL_OK")
</pallas_src>

<mosaic_0001>
module attributes {stable_mosaic.version = 11 : i64} {
  func.func @kernel(%arg0: memref<8x16xf32, #tpu.memory_space<vmem>>, %arg1: memref<16x32xf32, #tpu.memory_space<vmem>>, %arg2: memref<1x32xf32, #tpu.memory_space<vmem>>, %arg3: memref<1x32xf32, #tpu.memory_space<vmem>>, %arg4: memref<32x32xf32, #tpu.memory_space<vmem>>, %arg5: memref<1x32xf32, #tpu.memory_space<vmem>>, %arg6: memref<1x32xf32, #tpu.memory_space<vmem>>, %arg7: memref<32x128xf32, #tpu.memory_space<vmem>>, %arg8: memref<1x128xf32, #tpu.memory_space<vmem>>, %arg9: memref<8x128xf32, #tpu.memory_space<vmem>>) attributes {dimension_semantics = [], scalar_prefetch = 0 : i64, scratch_operands = 0 : i64, tpu.core_type = #tpu.core_type<tc>} {
    %c0 = arith.constant 0 : index
    %c0_0 = arith.constant 0 : index
    %0 = vector.load %arg0[%c0, %c0_0] : memref<8x16xf32, #tpu.memory_space<vmem>>, vector<8x16xf32>
    %c0_1 = arith.constant 0 : index
    %c0_2 = arith.constant 0 : index
    %1 = vector.load %arg1[%c0_1, %c0_2] : memref<16x32xf32, #tpu.memory_space<vmem>>, vector<16x32xf32>
    %c0_3 = arith.constant 0 : index
    %c0_4 = arith.constant 0 : index
    %2 = vector.load %arg2[%c0_3, %c0_4] : memref<1x32xf32, #tpu.memory_space<vmem>>, vector<1x32xf32>
    %c0_5 = arith.constant 0 : index
    %c0_6 = arith.constant 0 : index
    %3 = vector.load %arg3[%c0_5, %c0_6] : memref<1x32xf32, #tpu.memory_space<vmem>>, vector<1x32xf32>
    %cst = arith.constant dense<0.000000e+00> : vector<8x32xf32>
    %4 = tpu.matmul %0, %1, %cst {dimension_numbers = #tpu.dot_dimension_numbers<[1], [0], [0], [1], [0, 0, 1, 1], [], []>} : vector<8x16xf32>, vector<16x32xf32>, vector<8x32xf32> -> vector<8x32xf32>
    %5 = vector.broadcast %2 : vector<1x32xf32> to vector<8x32xf32>
    %6 = arith.mulf %4, %5 : vector<8x32xf32>
    %7 = vector.broadcast %3 : vector<1x32xf32> to vector<8x32xf32>
    %8 = arith.addf %6, %7 : vector<8x32xf32>
    %cst_7 = arith.constant 0.000000e+00 : f32
    %9 = vector.broadcast %cst_7 : f32 to vector<8x32xf32>
    %10 = arith.maximumf %8, %9 : vector<8x32xf32>
    %c0_8 = arith.constant 0 : index
    %c0_9 = arith.constant 0 : index
    %11 = vector.load %arg4[%c0_8, %c0_9] : memref<32x32xf32, #tpu.memory_space<vmem>>, vector<32x32xf32>
    %c0_10 = arith.constant 0 : index
    %c0_11 = arith.constant 0 : index
    %12 = vector.load %arg5[%c0_10, %c0_11] : memref<1x32xf32, #tpu.memory_space<vmem>>, vector<1x32xf32>
    %c0_12 = arith.constant 0 : index
    %c0_13 = arith.constant 0 : index
    %13 = vector.load %arg6[%c0_12, %c0_13] : memref<1x32xf32, #tpu.memory_space<vmem>>, vector<1x32xf32>
    %cst_14 = arith.constant dense<0.000000e+00> : vector<8x32xf32>
    %14 = tpu.matmul %10, %11, %cst_14 {dimension_numbers = #tpu.dot_dimension_numbers<[1], [0], [0], [1], [0, 0, 1, 1], [], []>} : vector<8x32xf32>, vector<32x32xf32>, vector<8x32xf32> -> vector<8x32xf32>
    %15 = vector.broadcast %12 : vector<1x32xf32> to vector<8x32xf32>
    %16 = arith.mulf %14, %15 : vector<8x32xf32>
    %17 = vector.broadcast %13 : vector<1x32xf32> to vector<8x32xf32>
    %18 = arith.addf %16, %17 : vector<8x32xf32>
    %cst_15 = arith.constant 0.000000e+00 : f32
    %19 = vector.broadcast %cst_15 : f32 to vector<8x32xf32>
    %20 = arith.maximumf %18, %19 : vector<8x32xf32>
    %c0_16 = arith.constant 0 : index
    %c0_17 = arith.constant 0 : index
    %21 = vector.load %arg7[%c0_16, %c0_17] : memref<32x128xf32, #tpu.memory_space<vmem>>, vector<32x128xf32>
    %c0_18 = arith.constant 0 : index
    %c0_19 = arith.constant 0 : index
    %22 = vector.load %arg8[%c0_18, %c0_19] : memref<1x128xf32, #tpu.memory_space<vmem>>, vector<1x128xf32>
    %cst_20 = arith.constant dense<0.000000e+00> : vector<8x128xf32>
    %23 = tpu.matmul %20, %21, %cst_20 {dimension_numbers = #tpu.dot_dimension_numbers<[1], [0], [0], [1], [0, 0, 1, 1], [], []>} : vector<8x32xf32>, vector<32x128xf32>, vector<8x128xf32> -> vector<8x128xf32>
    %24 = vector.broadcast %22 : vector<1x128xf32> to vector<8x128xf32>
    %25 = arith.addf %23, %24 : vector<8x128xf32>
    %c0_21 = arith.constant 0 : index
    %c0_22 = arith.constant 0 : index
    %26 = vector.load %arg9[%c0_21, %c0_22] : memref<8x128xf32, #tpu.memory_space<vmem>>, vector<8x128xf32>
    tpu.vector_store %arg9[%c0_21, %c0_22], %25 {strides = array<i32>} : memref<8x128xf32, #tpu.memory_space<vmem>>, vector<8x128xf32>,
    return
  }
}

</mosaic_0001>

<bundles_post_ra>
// kernel: _forward_impl.1
= control target key start
LH: loop header
LB: loop body
LE: loop exit
PB: predicated region body
PF: predicated region fallthrough
CT: control target
= control target key end

     0   :  { %14 = vsyncpa [#allocation3], 0  ;;  %s609_s0 = inlined_call_operand.hbm [shape: f32[8,16], index: 0, kind: input, shape index: {}]   ;;  %s610_s1 = inlined_call_operand.hbm [shape: f32[16,32], index: 1, kind: input, shape index: {}]   ;;  %s611_s2 = inlined_call_operand.vmem [shape: f32[1,32], index: 2, kind: input, shape index: {}]   ;;  %s612_s3 = inlined_call_operand.vmem [shape: f32[1,32], index: 3, kind: input, shape index: {}]   ;;  %s613_s4 = inlined_call_operand.hbm [shape: f32[32,32], index: 4, kind: input, shape index: {}]   ;;  %s614_s5 = inlined_call_operand.vmem [shape: f32[1,32], index: 5, kind: input, shape index: {}]   ;;  %s615_s6 = inlined_call_operand.vmem [shape: f32[1,32], index: 6, kind: input, shape index: {}]   ;;  %s616_s7 = inlined_call_operand.hbm [shape: f32[32,128], index: 7, kind: input, shape index: {}]   ;;  %s617_s8 = inlined_call_operand.vmem [shape: f32[1,128], index: 8, kind: input, shape index: {}]   ;;  %s618_s9 = inlined_call_operand.vmem [shape: f32[8,128], index: 9, kind: output, shape index: {}]  }
   0x1   :  { %15 = vsyncpa [#allocation5], 0 }
   0x2   :  { %16 = vsyncpa [#allocation8], 0  ;;  %s510_s30 = smov [#allocation4]  }
   0x3   :  { %s32_s10 = sshll.u32 %s510_s30, 4  ;;  %s33_s10 = int_to_ptr.vmem [resolvable:$true] %s32_s10 }
   0x4   :  { %s432_s11 = scalar_lea.vmem %s33_s10, 256  ;;  %p437_p1 = scmp.lt.s32.totalorder %s33_s10, %s33_s10 }
   0x5   :  { %p433_p0 = scmp.ne.s32.totalorder %s33_s10, %s432_s11  ;;  %p438_p2 = scmp.lt.s32.totalorder %s432_s11, %s432_s11 }
   0x7   :  { %p439_p3 = por %p438_p2, %p437_p1 }
   0x9   :  { %p440_p4 = pnand %p439_p3, %p433_p0 }
   0xb   :  { %443 = shalt.err (!%p440_p4)
}
   0xc   :  { %s511_s12 = smov 128   ;;  %s512_s13 = smov 8  }
   0xd   :  { %38 = dma.hbm_to_vmem [thread:$0]  %s610_s1, 256, %s33_s10, [#allocation5], %s511_s12, %s511_s12, %s512_s13  }
   0xe   :  { %s513_s16 = smov [#allocation2]   ;;  %s514_s18 = smov [#allocation6]  }
   0xf   :  { %s23_s17 = sshll.u32 %s513_s16, 4  ;;  %s48_s19 = sshll.u32 %s514_s18, 4  ;;  %s24_s17 = int_to_ptr.vmem [resolvable:$true] %s23_s17  ;;  %s49_s19 = int_to_ptr.vmem [resolvable:$true] %s48_s19 }
  0x10   :  { %s452_s20 = scalar_lea.vmem %s24_s17, 128  ;;  %p457_p6 = scmp.lt.s32.totalorder %s24_s17, %s24_s17 }
  0x11   :  { %p453_p5 = scmp.ne.s32.totalorder %s24_s17, %s452_s20  ;;  %p458_p7 = scmp.lt.s32.totalorder %s452_s20, %s452_s20 }
  0x13   :  { %p459_p8 = por %p458_p7, %p457_p6 }
  0x15   :  { %p460_p9 = pnand %p459_p8, %p453_p5 }
  0x17   :  { %463 = shalt.err (!%p460_p9)
}
  0x18   :  { %26 = dma.hbm_to_vmem [thread:$0]  %s609_s0, 128, %s24_s17, [#allocation3]  }
  0x19   :  { %s472_s23 = scalar_lea.vmem %s49_s19, 512  ;;  %p477_p11 = scmp.lt.s32.totalorder %s49_s19, %s49_s19 }
  0x1a   :  { %p473_p10 = scmp.ne.s32.totalorder %s49_s19, %s472_s23  ;;  %p478_p12 = scmp.lt.s32.totalorder %s472_s23, %s472_s23 }
  0x1c   :  { %p479_p13 = por %p478_p12, %p477_p11 }
  0x1e   :  { %p480_p0 = pnand %p479_p13, %p473_p10 }
  0x20   :  { %483 = shalt.err (!%p480_p0)
}
  0x21   :  { %54 = dma.hbm_to_vmem [thread:$0]  %s613_s4, 512, %s49_s19, [#allocation5], %s511_s12, %s511_s12, %s512_s13  }
  0x22   :  { %s515_s25 = smov [#allocation7]  }
  0x23   :  { %s64_s26 = sshll.u32 %s515_s25, 4  ;;  %s65_s26 = int_to_ptr.vmem [resolvable:$true] %s64_s26 }
  0x24   :  { %s492_s27 = scalar_lea.vmem %s65_s26, 512  ;;  %p497_p2 = scmp.lt.s32.totalorder %s65_s26, %s65_s26 }
  0x25   :  { %p493_p1 = scmp.ne.s32.totalorder %s65_s26, %s492_s27  ;;  %p498_p3 = scmp.lt.s32.totalorder %s492_s27, %s492_s27 }
  0x27   :  { %p499_p4 = por %p498_p3, %p497_p2 }
  0x29   :  { %p500_p5 = pnand %p499_p4, %p493_p1 }
  0x2b   :  { %503 = shalt.err (!%p500_p5)
}
  0x2c   :  { %70 = dma.hbm_to_vmem [thread:$0]  %s616_s7, 512, %s65_s26, [#allocation8], %s511_s12, %s511_s12, %s512_s13  }
  0x2d   :  { %504 = dma.done.wait [#allocation3], 128  }
  0x2e   :  { %505 = vsyncadd [#allocation3], 4294967168 }
  0x2f   :  { %506 = dma.done.wait [#allocation5], 768  }
  0x30   :  { %507 = vsyncadd [#allocation5], 4294966528 }
  0x31   :  { %508 = dma.done.wait [#allocation8], 512  }
  0x32   :  { %509 = vsyncadd [#allocation8], 4294966784  ;;  %v516_v0 = vmov 0.0   ;;  %vm517_vm0 = vmmov 0   ;;  %v87_v1 = vld [vmem:[#allocation4 + $0x8] sm:$0xff]  ;;  %v86_v2 = vld [vmem:[#allocation4] sm:$0xff] }
  0x33   :  { %387 = vmatprep.subr.mxu0 %v516_v0  ;;  %391 = vmatprep.mubr.msk.f32.mxu0 %vm517_vm0, %v516_v0  ;;  %v85_v3 = vld [vmem:[#allocation2] sm:$0xff]  ;;  %vm90_vm1 = vcmask 130048   ;;  %v182_v4 = vld [vmem:[#allocation6 + $0x18] sm:$0xff]  ;;  %v181_v5 = vld [vmem:[#allocation6 + $0x10] sm:$0xff]  ;;  %vm185_vm2 = vcmask 261120  }
  0x34   :  { %394 = vmatprep.subr.mxu1 %v516_v0  ;;  %402 = vmatprep.mubr.msk.f32.mxu1 %vm517_vm0, %v516_v0  ;;  %v180_v6 = vld [vmem:[#allocation6 + $0x8] sm:$0xff]  ;;  %v179_v7 = vld [vmem:[#allocation6] sm:$0xff]  ;;  %v277_v15 = vld [vmem:[#allocation7 + $0x18] sm:$0xff] }
  0x35   :  { %388 = vmatpush3.msra.mxu0 %v87_v1  ;;  %395 = vmatpush3.msra.mxu1 %v182_v4  ;;  %v367_v8 = vld [vmem:[%s611_s2] ss:$0 sm:$0xff]  ;;  %v276_v16 = vld [vmem:[#allocation7 + $0x10] sm:$0xff]  ;;  %v274_v18 = vld [vmem:[#allocation7] sm:$0xff] }
  0x36   :  { %389 = vmatprep.subr.mxu0 %v516_v0  ;;  %396 = vmatprep.subr.mxu1 %v516_v0  ;;  %v368_v9 = vld [vmem:[%s612_s3] ss:$0 sm:$0xff] }
  0x37   :  { %390 = vmatpush3.msra.mxu0 %v86_v2  ;;  %397 = vmatpush3.msra.mxu1 %v181_v5  ;;  %v275_v17 = vld [vmem:[#allocation7 + $0x8] sm:$0xff] }
  0x38   :  { %392 = vmatmul.mubr.msk.f32.vlgmr.msra.gmra.mxu0 %vm90_vm1, %v85_v3  ;;  %405 = vmatprep.subr.mxu0 %v516_v0  ;;  %v370_v19 = vld [vmem:[%s614_s5] ss:$0 sm:$0xff] }
  0x39   :  { %413 = vmatprep.mubr.msk.f32.mxu0 %vm517_vm0, %v516_v0  ;;  %398 = vmatprep.subr.mxu1 %v516_v0  ;;  %v371_v20 = vld [vmem:[%s615_s6] ss:$0 sm:$0xff] }
  0x3a   :  { %399 = vmatpush3.msra.mxu1 %v180_v6  ;;  %406 = vmatpush3.msra.mxu0 %v277_v15  ;;  %v372_v26 = vld [vmem:[%s617_s8] ss:$0 sm:$0xff] }
  0x3b   :  { %400 = vmatprep.subr.mxu1 %v516_v0  ;;  %407 = vmatprep.subr.mxu0 %v516_v0 }
  0x3c   :  { %401 = vmatpush3.msra.mxu1 %v179_v7  ;;  %408 = vmatpush3.msra.mxu0 %v276_v16 }
  0x3d   :  { %409 = vmatprep.subr.mxu0 %v516_v0 }
  0x3e   :  { %410 = vmatpush3.msra.mxu0 %v275_v17 }
  0x3f   :  { %411 = vmatprep.subr.mxu0 %v516_v0 }
  0x40   :  { %412 = vmatpush3.msra.mxu0 %v274_v18 }
  0xf8   :  { %v160_v10 = vpop.f32.mrf.mxu0 }
  0xf9   :  { %v170_v11 = vmul.f32 %v367_v8, %v160_v10 }
  0xfa   :  { %v393_v12 = vpop.f32.mrf.mxu0 }
  0xfb   :  { %v177_v13 = vadd.f32 %v368_v9, %v170_v11 }
  0xfd   :  { %v178_v14 = vmax.f32 %v177_v13, 0.0 }
  0xff   :  { %403 = vmatmul.mubr.msk.f32.vlgmr.msra.gmra.mxu1 %vm185_vm2, %v178_v14 }
 0x1bf   :  { %v255_v21 = vpop.f32.mrf.mxu1 }
 0x1c0   :  { %v265_v22 = vmul.f32 %v370_v19, %v255_v21 }
 0x1c1   :  { %v404_v23 = vpop.f32.mrf.mxu1 }
 0x1c2   :  { %v272_v24 = vadd.f32 %v371_v20, %v265_v22 }
 0x1c4   :  { %v273_v25 = vmax.f32 %v272_v24, 0.0 }
 0x1c6   :  { %414 = vmatmul.mubr.msk.f32.vlgmr.msra.gmra.mxu0 %vm185_vm2, %v273_v25 }
 0x286   :  { %v354_v27 = vpop.f32.mrf.mxu0 }
 0x287   :  { %v355_v28 = vadd.f32 %v372_v26, %v354_v27 }
 0x288   :  { %v415_v29 = vpop.f32.mrf.mxu0 }
 0x289   :  { %358 = vst [vmem:[%s618_s9] sm:$0xff] %v355_v28 }
 0x28a   :  { %363 = vsyncpa [#allocation3], 1 }
 0x28b   :  { %364 = vsyncpa [#allocation5], 1 }
 0x28c   :  { %365 = vsyncpa [#allocation8], 1 }

</bundles_post_ra>
